<compile_context>
chip_gen: v5e
topology: v5e:2x2
jax: 0.10.0
libtpu: 0.0.40
codegen_flags: <defaults>
</compile_context>

<pallas_src>
import functools
import math

import jax
import jax.numpy as jnp
from jax.experimental import pallas as pl
from jax.experimental.pallas import tpu as pltpu

LANE = 128
SUBLANES = 8
ROW_TILE = SUBLANES * LANE       # 1024: prefix/tail split boundary
MAX_BLOCK_ROWS = 2048            # (2048, 128) f32 tile = 1 MiB per input buffer


def _sigmoid(x, *, in_kernel):
    """sigmoid(x) from one exp(-|x|); approx EUP reciprocal inside the kernel."""
    z = jnp.exp(-jnp.abs(x))
    num = jnp.where(x >= 0.0, 1.0, z)
    if in_kernel:
        return num * pl.reciprocal(1.0 + z, approx=True)
    return num / (1.0 + z)


def _elem_terms(x, t, *, in_kernel):
    """Per-element terms: (bce_i, e_i = exp(sigmoid(x_i)), e_i^2).

    BCE uses the softplus decomposition with torch's -100 log clamp kept exactly:
      bce = (1-t)*min(softplus(x),100) + t*min(softplus(-x),100)
    """
    z = jnp.exp(-jnp.abs(x))                  # in (0, 1]
    log1pz = jnp.log(1.0 + z)
    sp_pos = jnp.maximum(x, 0.0) + log1pz     # softplus(x)  = -log(1 - p)
    sp_neg = sp_pos - x                       # softplus(-x) = -log(p)
    a = jnp.minimum(sp_pos, 100.0)            # torch BCE clamps log terms at -100
    b = jnp.minimum(sp_neg, 100.0)
    bce = a + t * (b - a)                     # (1-t)*a + t*b
    num = jnp.where(x >= 0.0, 1.0, z)
    if in_kernel:
        p = num * pl.reciprocal(1.0 + z, approx=True)   # sigmoid(x)
    else:
        p = num / (1.0 + z)
    e = jnp.exp(p)                            # p in (0,1) -> no overflow, max e
    return bce, e, e * e


def _pow_int_or_general(base, gamma):
    """base**gamma with small integer gammas strength-reduced to multiplies."""
    g = float(gamma)
    if g == 1.0:
        return base
    if g == 2.0:
        return base * base
    if g == 3.0:
        return base * base * base
    if g == 4.0:
        b2 = base * base
        return b2 * b2
    return jnp.exp(g * jnp.log(base))         # base >= eps > 0 on this path


def _pass1_kernel(x_ref, t_ref, o_ref, *, block_rows, tail_rows, needs_mask,
                  ncores, npc):
    """Streams (block_rows,128) tiles; accumulates sum(bce), sum(e), sum(e^2)
    into the resident (1,3,8,128) output block (one (8,128) '+=' per term)."""
    c = pl.program_id(0)
    i = pl.program_id(1)

    @pl.when(i == 0)
    def _init():
        o_ref[...] = jnp.zeros_like(o_ref)

    x = x_ref[...].astype(jnp.float32)
    t = t_ref[...].astype(jnp.float32)
    bce, e, e2 = _elem_terms(x, t, in_kernel=True)

    def _fold(v):
        # (block_rows,128) -> (8,128): vreg-tile tree add (pure VALU, no stores).
        return jnp.sum(v.reshape(block_rows // SUBLANES, SUBLANES, LANE), axis=0)

    def _acc(bce_v, e_v, e2_v):
        o_ref[0, 0] += _fold(bce_v)
        o_ref[0, 1] += _fold(e_v)
        o_ref[0, 2] += _fold(e2_v)

    if needs_mask:
        is_last = jnp.logical_and(c == ncores - 1, i == npc - 1)

        @pl.when(jnp.logical_not(is_last))
        def _full():
            _acc(bce, e, e2)

        @pl.when(is_last)
        def _tail():
            # Rows past the array edge are unspecified; mask with a SELECT so
            # NaN/Inf garbage cannot propagate into the sums.
            row = jax.lax.broadcasted_iota(jnp.int32, bce.shape, 0)
            keep = row < tail_rows
            zero = jnp.zeros_like(bce)
            _acc(jnp.where(keep, bce, zero),
                 jnp.where(keep, e, zero),
                 jnp.where(keep, e2, zero))
    else:
        _acc(bce, e, e2)


def _pass2_kernel(denom_ref, x_ref, o_ref, *, block_rows, tail_rows, needs_mask,
                  ncores, npc, gamma, eps):
    """Fallback second streaming pass (non-2 gamma or active clamp):
    accumulates sum((1 - clip(exp(p)/denom))^gamma) over the prefix."""
    c = pl.program_id(0)
    i = pl.program_id(1)

    @pl.when(i == 0)
    def _init():
        o_ref[...] = jnp.zeros_like(o_ref)

    x = x_ref[...].astype(jnp.float32)
    p = _sigmoid(x, in_kernel=True)
    logit = jnp.exp(p) * (1.0 / denom_ref[0])       # scalar divide, vector mul
    logit = jnp.clip(logit, eps, 1.0 - eps)
    focal = _pow_int_or_general(1.0 - logit, gamma)

    def _fold(v):
        return jnp.sum(v.reshape(block_rows // SUBLANES, SUBLANES, LANE), axis=0)

    if needs_mask:
        is_last = jnp.logical_and(c == ncores - 1, i == npc - 1)

        @pl.when(jnp.logical_not(is_last))
        def _full():
            o_ref[0] += _fold(focal)

        @pl.when(is_last)
        def _tail():
            row = jax.lax.broadcasted_iota(jnp.int32, focal.shape, 0)
            o_ref[0] += _fold(jnp.where(row < tail_rows, focal,
                                        jnp.zeros_like(focal)))
    else:
        o_ref[0] += _fold(focal)


def _default_core_split():
    """2 on chips with two TensorCores per device (v7x-class / megacore), else 1."""
    try:
        kind = jax.devices()[0].device_kind.lower()
    except Exception:
        return 1
    if ("v7" in kind) or ("v4" in kind) or ("v5p" in kind):
        return 2
    return 1


def focal_loss(x, target, gamma=2.0, eps=1e-7, *,
               max_block_rows=MAX_BLOCK_ROWS, core_split=None):
    """JAX/Pallas port of FocalLoss.forward; returns a scalar float32."""
    n = int(x.size)
    if n == 0:
        return jnp.float32(float("nan"))     # mean over empty, matches torch
    gamma = float(gamma)
    eps = float(eps)
    assert max_block_rows % SUBLANES == 0    # 32-multiple recommended for int8 t

    xf = jnp.ravel(x)
    tf = jnp.ravel(target)

    # Split at an (8*128)-element boundary: the prefix is streamed as a
    # lane-dense (rows, 128) slab with rows a multiple of 8 (so the in-register
    # fold is a layout-preserving reshape); the <1024-element tail is handled
    # in plain JAX.  No whole-array pad/copy (review item 4).
    rem = n % ROW_TILE
    n_pref = n - rem
    rows = n_pref // LANE
    n_f = jnp.float32(n)

    e_tail = None
    if rem:
        x_tail = xf[n_pref:].astype(jnp.float32)
        t_tail = tf[n_pref:].astype(jnp.float32)
        bce_t, e_tail, e2_t = _elem_terms(x_tail, t_tail, in_kernel=False)
        tail_sums = jnp.stack([jnp.sum(bce_t), jnp.sum(e_tail), jnp.sum(e2_t)])
    else:
        tail_sums = jnp.zeros((3,), jnp.float32)

    ncores = 1
    npc = 0
    block_rows = 0
    tail_rows = 0
    needs_mask = False
    x2 = None

    if rows > 0:
        x2 = xf[:n_pref].reshape(rows, LANE)       # free reshape when rem == 0
        t2 = tf[:n_pref].reshape(rows, LANE)       # target kept in caller dtype

        block_rows = min(max_block_rows, rows)     # always a multiple of 8
        nblocks = -(-rows // block_rows)
        tail_rows = rows - (nblocks - 1) * block_rows
        needs_mask = tail_rows != block_rows

        split = _default_core_split() if core_split is None else int(core_split)
        ncores = split if (split > 1 and nblocks >= split
                           and nblocks % split == 0) else 1
        npc = nblocks // ncores

        kernel1 = functools.partial(
            _pass1_kernel, block_rows=block_rows, tail_rows=tail_rows,
            needs_mask=needs_mask, ncores=ncores, npc=npc)
        part = pl.pallas_call(
            kernel1,
            out_shape=jax.ShapeDtypeStruct((ncores, 3, SUBLANES, LANE),
                                           jnp.float32),
            grid=(ncores, npc),
            in_specs=[
                pl.BlockSpec((block_rows, LANE), lambda c, i: (c * npc + i, 0)),
                pl.BlockSpec((block_rows, LANE), lambda c, i: (c * npc + i, 0)),
            ],
            out_specs=pl.BlockSpec((1, 3, SUBLANES, LANE),
                                   lambda c, i: (c, 0, 0, 0)),
            compiler_params=pltpu.CompilerParams(
                dimension_semantics=("parallel", "arbitrary"),
                vmem_limit_bytes=32 * 1024 * 1024),
        )(x2, t2)
        sums = jnp.sum(part, axis=(0, 2, 3)) + tail_sums
    else:
        sums = tail_sums                      # everything fit in the tail path

    bce_sum, denom, e2_sum = sums[0], sums[1], sums[2]
    bce_mean = bce_sum / n_f

    # clamp(logit, eps, 1-eps) is provably inactive when
    #   1/(e*n) >= eps  and  e/n <= 1 - eps   (p in (0,1) => e_i in (1, e)).
    clamp_inactive = (1.0 / (math.e * n) >= eps) and (math.e / n <= 1.0 - eps)

    if gamma == 2.0 and clamp_inactive:
        # Single HBM pass: softmax sums to 1, so
        #   sum_i (1 - l_i)^2 = n - 2 + sum_i l_i^2 = n - 2 + sum(e^2)/denom^2.
        focal_sum = n_f - 2.0 + e2_sum / (denom * denom)
    else:
        focal_sum = jnp.float32(0.0)
        if rows > 0:
            kernel2 = functools.partial(
                _pass2_kernel, block_rows=block_rows, tail_rows=tail_rows,
                needs_mask=needs_mask, ncores=ncores, npc=npc,
                gamma=gamma, eps=eps)
            part2 = pl.pallas_call(
                kernel2,
                out_shape=jax.ShapeDtypeStruct((ncores, SUBLANES, LANE),
                                               jnp.float32),
                grid=(ncores, npc),
                in_specs=[
                    pl.BlockSpec(memory_space=pltpu.MemorySpace.SMEM),
                    pl.BlockSpec((block_rows, LANE),
                                 lambda c, i: (c * npc + i, 0)),
                ],
                out_specs=pl.BlockSpec((1, SUBLANES, LANE),
                                       lambda c, i: (c, 0, 0)),
                compiler_params=pltpu.CompilerParams(
                    dimension_semantics=("parallel", "arbitrary"),
                    vmem_limit_bytes=32 * 1024 * 1024),
            )(jnp.reshape(denom, (1,)), x2)
            focal_sum = jnp.sum(part2)
        if rem:
            logit_t = jnp.clip(e_tail / denom, eps, 1.0 - eps)
            focal_sum = focal_sum + jnp.sum(
                _pow_int_or_general(1.0 - logit_t, gamma))

    return bce_mean * (focal_sum / n_f)


def _focal_loss_ref(x, target, gamma=2.0, eps=1e-7):
    """Pure-JAX reference matching the PyTorch module."""
    p = jax.nn.sigmoid(jnp.ravel(x).astype(jnp.float32))
    t = jnp.ravel(target).astype(jnp.float32)
    logit = jax.nn.softmax(p, axis=-1)
    logit = jnp.clip(logit, eps, 1.0 - eps)
    log_p = jnp.maximum(jnp.log(p), -100.0)
    log_1mp = jnp.maximum(jnp.log(1.0 - p), -100.0)
    bce = jnp.mean(-(t * log_p + (1.0 - t) * log_1mp))
    loss = bce * (1.0 - logit) ** gamma
    return jnp.mean(loss)


def _check(out, ref, tag):
    if not jnp.allclose(out, ref, rtol=2e-5, atol=2e-6):
        raise AssertionError(f"{tag} mismatch: kernel={out} ref={ref}")


if __name__ == "__main__":
    key = jax.random.PRNGKey(0)
    k1, k2, k3, k4 = jax.random.split(key, 4)

    # Primary case: small NCHW logits + binary targets, default gamma/eps.
    x = jax.random.normal(k1, (2, 4, 16, 16), dtype=jnp.float32)
    target = (jax.random.uniform(k2, (2, 4, 16, 16)) > 0.5).astype(jnp.float32)
    out = jax.block_until_ready(focal_loss(x, target))
    _check(out, _focal_loss_ref(x, target), "gamma=2 aligned")

    # Ragged size (not a multiple of 8*128): plain-JAX tail + kernel prefix.
    xr = jax.random.normal(k3, (3, 5, 7, 11), dtype=jnp.float32)
    tr = (jax.random.uniform(k4, (3, 5, 7, 11)) > 0.5).astype(jnp.float32)
    out = jax.block_until_ready(focal_loss(xr, tr))
    _check(out, _focal_loss_ref(xr, tr), "gamma=2 ragged")

    # Non-default gamma: exercises the streaming second pass (+ ragged tail).
    out = jax.block_until_ready(focal_loss(x, target, gamma=3.0))
    _check(out, _focal_loss_ref(x, target, gamma=3.0), "gamma=3 two-pass")
    out = jax.block_until_ready(focal_loss(xr, tr, gamma=3.0))
    _check(out, _focal_loss_ref(xr, tr, gamma=3.0), "gamma=3 ragged")

    # Multi-block grid + masked last block + forced 2-core split (serialises on
    # single-TensorCore chips, shards across both cores on v7x-class chips).
    xm = jax.random.normal(k1, (2, 4, 20, 24), dtype=jnp.float32)
    tgm = (jax.random.uniform(k2, (2, 4, 20, 24)) > 0.5).astype(jnp.float32)
    out = jax.block_until_ready(
        focal_loss(xm, tgm, max_block_rows=16, core_split=2))
    _check(out, _focal_loss_ref(xm, tgm), "gamma=2 multi-block 2-core")
    out = jax.block_until_ready(
        focal_loss(xm, tgm, gamma=3.0, max_block_rows=16, core_split=2))
    _check(out, _focal_loss_ref(xm, tgm, gamma=3.0), "gamma=3 multi-block 2-core")

    # Narrow target dtype streamed as-is (cast to f32 inside the kernel).
    out = jax.block_until_ready(focal_loss(x, target.astype(jnp.bfloat16)))
    _check(out, _focal_loss_ref(x, target), "gamma=2 bf16 target")

    print("KERNEL_OK")
</pallas_src>

<mosaic_0001>
module attributes {stable_mosaic.version = 11 : i64} {
  func.func @_pass1_kernel(%arg0: i32, %arg1: i32, %arg2: memref<16x128xf32, #tpu.memory_space<vmem>>, %arg3: memref<16x128xf32, #tpu.memory_space<vmem>>, %arg4: memref<1x3x8x128xf32, #tpu.memory_space<vmem>>) attributes {dimension_semantics = [#tpu.dimension_semantics<parallel>, #tpu.dimension_semantics<arbitrary>], iteration_bounds = array<i64: 1, 1>, scalar_prefetch = 0 : i64, scratch_operands = 0 : i64, tpu.core_type = #tpu.core_type<tc>, window_params = [{transform_indices = @transform_0, window_bounds = array<i64: 16, 128>}, {transform_indices = @transform_1, window_bounds = array<i64: 16, 128>}, {transform_indices = @transform_2, window_bounds = array<i64: 1, 3, 8, 128>}]} {
    %c0_i32 = arith.constant 0 : i32
    %0 = arith.cmpi eq, %arg1, %c0_i32 : i32
    %1 = arith.extui %0 : i1 to i32
    %c0_i32_0 = arith.constant 0 : i32
    %2 = arith.cmpi ne, %1, %c0_i32_0 : i32
    scf.if %2 {
      %cst_36 = arith.constant 0.000000e+00 : f32
      %57 = vector.broadcast %cst_36 : f32 to vector<1x3x8x128xf32>
      %c0_37 = arith.constant 0 : index
      %c0_38 = arith.constant 0 : index
      %c0_39 = arith.constant 0 : index
      %c0_40 = arith.constant 0 : index
      %58 = vector.load %arg4[%c0_37, %c0_38, %c0_39, %c0_40] : memref<1x3x8x128xf32, #tpu.memory_space<vmem>>, vector<1x3x8x128xf32>
      tpu.vector_store %arg4[%c0_37, %c0_38, %c0_39, %c0_40], %57 {strides = array<i32>} : memref<1x3x8x128xf32, #tpu.memory_space<vmem>>, vector<1x3x8x128xf32>,
    } else {
    }
    %c0 = arith.constant 0 : index
    %c0_1 = arith.constant 0 : index
    %3 = vector.load %arg2[%c0, %c0_1] : memref<16x128xf32, #tpu.memory_space<vmem>>, vector<16x128xf32>
    %c0_2 = arith.constant 0 : index
    %c0_3 = arith.constant 0 : index
    %4 = vector.load %arg3[%c0_2, %c0_3] : memref<16x128xf32, #tpu.memory_space<vmem>>, vector<16x128xf32>
    %5 = math.absf %3 : vector<16x128xf32>
    %cst = arith.constant 0.000000e+00 : f32
    %6 = vector.broadcast %cst : f32 to vector<16x128xf32>
    %7 = arith.subf %6, %5 : vector<16x128xf32>
    %8 = math.exp %7 : vector<16x128xf32>
    %cst_4 = arith.constant 1.000000e+00 : f32
    %9 = vector.broadcast %cst_4 : f32 to vector<16x128xf32>
    %10 = arith.addf %9, %8 : vector<16x128xf32>
    %11 = math.log %10 : vector<16x128xf32>
    %cst_5 = arith.constant 0.000000e+00 : f32
    %12 = vector.broadcast %cst_5 : f32 to vector<16x128xf32>
    %13 = arith.maximumf %3, %12 : vector<16x128xf32>
    %14 = arith.addf %13, %11 : vector<16x128xf32>
    %15 = arith.subf %14, %3 : vector<16x128xf32>
    %cst_6 = arith.constant 1.000000e+02 : f32
    %16 = vector.broadcast %cst_6 : f32 to vector<16x128xf32>
    %17 = arith.minimumf %14, %16 : vector<16x128xf32>
    %cst_7 = arith.constant 1.000000e+02 : f32
    %18 = vector.broadcast %cst_7 : f32 to vector<16x128xf32>
    %19 = arith.minimumf %15, %18 : vector<16x128xf32>
    %20 = arith.subf %19, %17 : vector<16x128xf32>
    %21 = arith.mulf %4, %20 : vector<16x128xf32>
    %22 = arith.addf %17, %21 : vector<16x128xf32>
    %cst_8 = arith.constant 0.000000e+00 : f32
    %23 = vector.broadcast %cst_8 : f32 to vector<16x128xf32>
    %24 = arith.cmpf oge, %3, %23 : vector<16x128xf32>
    %cst_9 = arith.constant 1.000000e+00 : f32
    %25 = vector.broadcast %cst_9 : f32 to vector<16x128xf32>
    %26 = arith.select %24, %25, %8 : vector<16x128xi1>, vector<16x128xf32>
    %cst_10 = arith.constant 1.000000e+00 : f32
    %27 = vector.broadcast %cst_10 : f32 to vector<16x128xf32>
    %28 = arith.addf %27, %8 : vector<16x128xf32>
    %29 = tpu.reciprocal %28 {approx = true} : vector<16x128xf32> -> vector<16x128xf32>
    %30 = arith.mulf %26, %29 : vector<16x128xf32>
    %31 = math.exp %30 : vector<16x128xf32>
    %32 = arith.mulf %31, %31 : vector<16x128xf32>
    %c0_11 = arith.constant 0 : index
    %c0_12 = arith.constant 0 : index
    %c0_13 = arith.constant 0 : index
    %c0_14 = arith.constant 0 : index
    %33 = vector.load %arg4[%c0_11, %c0_12, %c0_13, %c0_14] : memref<1x3x8x128xf32, #tpu.memory_space<vmem>>, vector<1x1x8x128xf32>
    %34 = vector.shape_cast %33 : vector<1x1x8x128xf32> to vector<8x128xf32>
    %35 = vector.shape_cast %22 : vector<16x128xf32> to vector<2x8x128xf32>
    %cst_15 = arith.constant dense<0.000000e+00> : vector<8x128xf32>
    %36 = vector.multi_reduction <add>, %35, %cst_15 [0] : vector<2x8x128xf32> to vector<8x128xf32>
    %37 = arith.addf %34, %36 : vector<8x128xf32>
    %c0_16 = arith.constant 0 : index
    %c0_17 = arith.constant 0 : index
    %c0_18 = arith.constant 0 : index
    %c0_19 = arith.constant 0 : index
    %38 = vector.load %arg4[%c0_16, %c0_17, %c0_18, %c0_19] : memref<1x3x8x128xf32, #tpu.memory_space<vmem>>, vector<1x1x8x128xf32>
    %39 = vector.shape_cast %38 : vector<1x1x8x128xf32> to vector<8x128xf32>
    %40 = vector.shape_cast %37 : vector<8x128xf32> to vector<1x1x8x128xf32>
    tpu.vector_store %arg4[%c0_16, %c0_17, %c0_18, %c0_19], %40 {strides = array<i32>} : memref<1x3x8x128xf32, #tpu.memory_space<vmem>>, vector<1x1x8x128xf32>,
    %c0_20 = arith.constant 0 : index
    %c1 = arith.constant 1 : index
    %c0_21 = arith.constant 0 : index
    %c0_22 = arith.constant 0 : index
    %41 = vector.load %arg4[%c0_20, %c1, %c0_21, %c0_22] : memref<1x3x8x128xf32, #tpu.memory_space<vmem>>, vector<1x1x8x128xf32>
    %42 = vector.shape_cast %41 : vector<1x1x8x128xf32> to vector<8x128xf32>
    %43 = vector.shape_cast %31 : vector<16x128xf32> to vector<2x8x128xf32>
    %cst_23 = arith.constant dense<0.000000e+00> : vector<8x128xf32>
    %44 = vector.multi_reduction <add>, %43, %cst_23 [0] : vector<2x8x128xf32> to vector<8x128xf32>
    %45 = arith.addf %42, %44 : vector<8x128xf32>
    %c0_24 = arith.constant 0 : index
    %c1_25 = arith.constant 1 : index
    %c0_26 = arith.constant 0 : index
    %c0_27 = arith.constant 0 : index
    %46 = vector.load %arg4[%c0_24, %c1_25, %c0_26, %c0_27] : memref<1x3x8x128xf32, #tpu.memory_space<vmem>>, vector<1x1x8x128xf32>
    %47 = vector.shape_cast %46 : vector<1x1x8x128xf32> to vector<8x128xf32>
    %48 = vector.shape_cast %45 : vector<8x128xf32> to vector<1x1x8x128xf32>
    tpu.vector_store %arg4[%c0_24, %c1_25, %c0_26, %c0_27], %48 {strides = array<i32>} : memref<1x3x8x128xf32, #tpu.memory_space<vmem>>, vector<1x1x8x128xf32>,
    %c0_28 = arith.constant 0 : index
    %c2 = arith.constant 2 : index
    %c0_29 = arith.constant 0 : index
    %c0_30 = arith.constant 0 : index
    %49 = vector.load %arg4[%c0_28, %c2, %c0_29, %c0_30] : memref<1x3x8x128xf32, #tpu.memory_space<vmem>>, vector<1x1x8x128xf32>
    %50 = vector.shape_cast %49 : vector<1x1x8x128xf32> to vector<8x128xf32>
    %51 = vector.shape_cast %32 : vector<16x128xf32> to vector<2x8x128xf32>
    %cst_31 = arith.constant dense<0.000000e+00> : vector<8x128xf32>
    %52 = vector.multi_reduction <add>, %51, %cst_31 [0] : vector<2x8x128xf32> to vector<8x128xf32>
    %53 = arith.addf %50, %52 : vector<8x128xf32>
    %c0_32 = arith.constant 0 : index
    %c2_33 = arith.constant 2 : index
    %c0_34 = arith.constant 0 : index
    %c0_35 = arith.constant 0 : index
    %54 = vector.load %arg4[%c0_32, %c2_33, %c0_34, %c0_35] : memref<1x3x8x128xf32, #tpu.memory_space<vmem>>, vector<1x1x8x128xf32>
    %55 = vector.shape_cast %54 : vector<1x1x8x128xf32> to vector<8x128xf32>
    %56 = vector.shape_cast %53 : vector<8x128xf32> to vector<1x1x8x128xf32>
    tpu.vector_store %arg4[%c0_32, %c2_33, %c0_34, %c0_35], %56 {strides = array<i32>} : memref<1x3x8x128xf32, #tpu.memory_space<vmem>>, vector<1x1x8x128xf32>,
    return
  }
  func.func @transform_0(%arg0: i32, %arg1: i32) -> (i32, i32) {
    %c1_i32 = arith.constant 1 : i32
    %0 = arith.muli %arg0, %c1_i32 : i32
    %1 = arith.addi %0, %arg1 : i32
    %c0_i32 = arith.constant 0 : i32
    %c0_i32_0 = arith.constant 0 : i32
    return %1, %c0_i32 : i32, i32
  }
  func.func @transform_1(%arg0: i32, %arg1: i32) -> (i32, i32) {
    %c1_i32 = arith.constant 1 : i32
    %0 = arith.muli %arg0, %c1_i32 : i32
    %1 = arith.addi %0, %arg1 : i32
    %c0_i32 = arith.constant 0 : i32
    %c0_i32_0 = arith.constant 0 : i32
    return %1, %c0_i32 : i32, i32
  }
  func.func @transform_2(%arg0: i32, %arg1: i32) -> (i32, i32, i32, i32) {
    %c0_i32 = arith.constant 0 : i32
    %c0_i32_0 = arith.constant 0 : i32
    %c0_i32_1 = arith.constant 0 : i32
    %c0_i32_2 = arith.constant 0 : i32
    return %arg0, %c0_i32, %c0_i32_0, %c0_i32_1 : i32, i32, i32, i32
  }
}

</mosaic_0001>

<bundles_post_ra>
// kernel: tpu_custom_call.1
= control target key start
LH: loop header
LB: loop body
LE: loop exit
PB: predicated region body
PF: predicated region fallthrough
CT: control target
= control target key end

     0   :  { %7 = vsyncpa [#allocation3], 0  ;;  %s283_s0 = inlined_call_operand.hbm [shape: f32[16,128], index: 0, kind: input, shape index: {}]   ;;  %s284_s1 = inlined_call_operand.hbm [shape: f32[16,128], index: 1, kind: input, shape index: {}]   ;;  %s285_s2 = inlined_call_operand.hbm [shape: f32[1,3,8,128], index: 2, kind: output, shape index: {}]  }
   0x1   :  { %8 = vsyncpa [#allocation6], 0 }
   0x2   :  { %9 = vsyncpa [#allocation4], 0  ;;  %s18_s11 = sshll.u32 %s283_s0, 4  ;;  %s245_s12 = smov [#allocation2]   ;;  %s19_s11 = int_to_ptr.hbm [resolvable:$true] %s18_s11 }
   0x3   :  { %s20_s13 = sshll.u32 %s245_s12, 4  ;;  %s35_s16 = sshll.u32 %s284_s1, 4  ;;  %s21_s13 = int_to_ptr.vmem [resolvable:$true] %s20_s13  ;;  %s36_s16 = int_to_ptr.hbm [resolvable:$true] %s35_s16 }
   0x4   :  { %s246_s17 = smov 128   ;;  %s247_s18 = smov 8  }
   0x5   :  { %26 = dma.hbm_to_vmem [thread:$0]  %s19_s11, 256, %s21_s13, [#allocation3], %s246_s17, %s246_s17, %s247_s18  }
   0x6   :  { %s248_s19 = smov [#allocation5]  }
   0x7   :  { %s37_s20 = sshll.u32 %s248_s19, 4  ;;  %s38_s20 = int_to_ptr.vmem [resolvable:$true] %s37_s20 }
   0x8   :  { %43 = dma.hbm_to_vmem [thread:$0]  %s36_s16, 256, %s38_s20, [#allocation6], %s246_s17, %s246_s17, %s247_s18  }
   0x9   :  { %239 = dma.done.wait [#allocation3], 256  }
   0xa   :  { %240 = vsyncadd [#allocation3], 4294967040 }
   0xb   :  { %241 = dma.done.wait [#allocation6], 256  }
   0xc   :  { %242 = vsyncadd [#allocation6], 4294967040  ;;  %v63_v0 = vld [vmem:[#allocation2] sm:$0xff]  ;;  %v64_v1 = vld [vmem:[#allocation2 + $0x8] sm:$0xff]  ;;  %s249_s0 = smov [#allocation7]   ;;  %s131_s23 = sshll.u32 %s285_s2, 4  ;;  %s132_s23 = int_to_ptr.hbm [resolvable:$true] %s131_s23 }
   0xd   :  { %v67_v2 = vand.u32 2147483647, %v63_v0  ;;  %v68_v3 = vand.u32 2147483647, %v64_v1  ;;  %vm97_vm0 = vcmp.ge.f32.partialorder %v63_v0, 0.0  ;;  %vm98_vm1 = vcmp.ge.f32.partialorder %v64_v1, 0.0 }
   0xe   :  { %v81_v12 = vmax.f32 %v63_v0, 0.0  ;;  %v82_v14 = vmax.f32 %v64_v1, 0.0  ;;  %v65_v33 = vld [vmem:[#allocation5] sm:$0xff]  ;;  %v66_v35 = vld [vmem:[#allocation5 + $0x8] sm:$0xff]  ;;  %s129_s1 = sshll.u32 %s249_s0, 4  ;;  %s130_s1 = int_to_ptr.vmem [resolvable:$true] %s129_s1 }
   0xf   :  { %v69_v4 = vsub.f32 0.0, %v67_v2  ;;  %v70_v5 = vsub.f32 0.0, %v68_v3 }
  0x11   :  { %v71_v6 = vmul.f32 1.442695, %v69_v4  ;;  %v73_v7 = vmul.f32 1.442695, %v70_v5 }
  0x13   :  { %151 = vpow2.f32 %v71_v6 }
  0x14   :  { %153 = vpow2.f32 %v73_v7 }
  0x19   :  { %v152_v8 = vpop.eup %151 }
  0x1a   :  { %v154_v9 = vpop.eup %153  ;;  %v75_v10 = vadd.f32 1.0, %v152_v8  ;;  %v99_v15 = vsel %vm97_vm0, 1.0, %v152_v8 }
  0x1b   :  { %v76_v11 = vadd.f32 1.0, %v154_v9  ;;  %v100_v18 = vsel %vm98_vm1, 1.0, %v154_v9 }
  0x1c   :  { %155 = vlog2.f32 %v75_v10 }
  0x1d   :  { %157 = vlog2.f32 %v76_v11 }
  0x1e   :  { %159 = vrcp.f32 %v75_v10 }
  0x1f   :  { %161 = vrcp.f32 %v76_v11 }
  0x22   :  { %v156_v13 = vpop.eup %155 }
  0x23   :  { %v158_v16 = vpop.eup %157  ;;  %v78_v17 = vmul.f32 0.6931472, %v156_v13 }
  0x24   :  { %v160_v19 = vpop.eup %159  ;;  %v80_v20 = vmul.f32 0.6931472, %v158_v16 }
  0x25   :  { %v162_v21 = vpop.eup %161  ;;  %v83_v22 = vadd.f32 %v81_v12, %v78_v17  ;;  %v103_v23 = vmul.f32 %v160_v19, %v99_v15 }
  0x26   :  { %v84_v24 = vadd.f32 %v82_v14, %v80_v20  ;;  %v104_v25 = vmul.f32 %v162_v21, %v100_v18 }
  0x27   :  { %v85_v26 = vsub.f32 %v83_v22, %v63_v0  ;;  %v87_v27 = vmin.f32 %v83_v22, 100.0  ;;  %v105_v28 = vmul.f32 1.442695, %v103_v23 }
  0x28   :  { %v86_v29 = vsub.f32 %v84_v24, %v64_v1  ;;  %v88_v30 = vmin.f32 %v84_v24, 100.0  ;;  %v107_v31 = vmul.f32 1.442695, %v104_v25 }
  0x29   :  { %v89_v32 = vmin.f32 %v85_v26, 100.0  ;;  %163 = vpow2.f32 %v105_v28 }
  0x2a   :  { %v90_v34 = vmin.f32 %v86_v29, 100.0  ;;  %165 = vpow2.f32 %v107_v31 }
  0x2b   :  { %v91_v36 = vsub.f32 %v89_v32, %v87_v27 }
  0x2c   :  { %v92_v37 = vsub.f32 %v90_v34, %v88_v30 }
  0x2d   :  { %v93_v38 = vmul.f32 %v91_v36, %v65_v33 }
  0x2e   :  { %v94_v39 = vmul.f32 %v92_v37, %v66_v35 }
  0x2f   :  { %v164_v40 = vpop.eup %163  ;;  %v95_v41 = vadd.f32 %v93_v38, %v87_v27 }
  0x30   :  { %v166_v42 = vpop.eup %165  ;;  %v96_v43 = vadd.f32 %v94_v39, %v88_v30  ;;  %v109_v44 = vmul.f32 %v164_v40, %v164_v40 }
  0x31   :  { %v117_v45 = vadd.f32 %v166_v42, %v164_v40  ;;  %v110_v46 = vmul.f32 %v166_v42, %v166_v42 }
  0x32   :  { %v112_v47 = vadd.f32 %v96_v43, %v95_v41 }
  0x33   :  { %v122_v48 = vadd.f32 %v110_v46, %v109_v44  ;;  %119 = vst [vmem:[#allocation7 + $0x8] sm:$0xff] %v117_v45 }
  0x34   :  { %114 = vst [vmem:[#allocation7] sm:$0xff] %v112_v47 }
  0x35   :  { %124 = vst [vmem:[#allocation7 + $0x10] sm:$0xff] %v122_v48 }
  0x36   :  { %137 = dma.vmem_to_hbm [thread:$0]  %s130_s1, 384, %s132_s23, [#allocation4], %s246_s17, %s246_s17, %s247_s18  }
  0x37   :  { %243 = dma.done.wait [#allocation4], 384  }
  0x38   :  { %244 = vsyncadd [#allocation4], 4294966912 }
  0x39   :  { %142 = vsyncpa [#allocation3], 1 }
  0x3a   :  { %143 = vsyncpa [#allocation6], 1 }
  0x3b   :  { %144 = vsyncpa [#allocation4], 1 }

</bundles_post_ra>
